<compile_context>
chip_gen: v6e
topology: v6e:2x2x1
jax: 0.10.0
libtpu: 0.0.40
codegen_flags: <defaults>
</compile_context>

<pallas_src>
import jax
import jax.numpy as jnp
from jax.experimental import pallas as pl
from jax.experimental.pallas import tpu as pltpu


def _add_pos_kernel(x_ref, pos_ref, o_ref):
    # Works for both layouts:
    #   3-D path: x (tB, tT, D) + pos (1, tT, D)
    #   2-D path: x (tB, tF)    + pos (1, tF)
    o_ref[...] = x_ref[...] + pos_ref[...]


def _round_up(x: int, m: int) -> int:
    return ((x + m - 1) // m) * m


def _vmem_capacity_bytes() -> int:
    """Physical VMEM per core; conservative 64 MiB (v7x) fallback if query fails."""
    try:
        return int(pltpu.get_tpu_info().vmem_capacity_bytes)
    except Exception:
        return 64 * 1024 * 1024


def _sublane_align(itemsize: int) -> int:
    # Physical sublane packing: 8 for f32, 16 for bf16, 32 for int8/fp8.
    return max(8, 32 // max(1, itemsize))


def _per_buffer_target(vmem_cap: int) -> int:
    # ~16 MiB/buffer on 128 MiB parts (v5e/v6e), ~4 MiB/buffer on 64 MiB parts (v7x).
    if vmem_cap >= (128 << 20):
        return vmem_cap // 8
    return max(1 << 20, vmem_cap // 16)


def _choose_tiles_3d(B: int, T: int, D: int, itemsize: int, vmem_cap: int):
    """Tiles for the lane-dense 3-D path (requires D % 128 == 0)."""
    sub = _sublane_align(itemsize)
    target = _per_buffer_target(vmem_cap)
    row_bytes = D * itemsize                       # D % 128 == 0 -> no lane padding

    if B * sub * row_bytes <= target:
        # Full batch per tile; grow the token tile toward the per-buffer target.
        tB = B
        tT = max(sub, (target // (B * row_bytes)) // sub * sub)
        tT = min(tT, T)
    else:
        # Even `sub` aligned rows at full batch overshoot the target: tile batch too.
        tT = min(T, sub)
        tB = max(1, min(B, target // max(1, _round_up(tT, sub) * row_bytes)))

    # v7x megacore: keep >= 2 steps on the outer (token) grid axis when possible.
    if pl.cdiv(T, tT) < 2 and T >= 2 * sub:
        tT = min(T, _round_up(pl.cdiv(T, 2), sub))
    return tB, tT


def _choose_tiles_2d(B: int, F: int, itemsize: int, vmem_cap: int):
    """Tiles for the flattened fallback path (F = T * D)."""
    sub = _sublane_align(itemsize)
    target = _per_buffer_target(vmem_cap)

    tB = B if B <= 4 * sub else 4 * sub            # == B (legal) or a multiple of sub
    padded_rows = _round_up(tB, sub)               # physical sublane padding

    if F < 128 or padded_rows * F * itemsize <= target:
        tF = F                                     # full trailing extent (always legal)
    else:
        max_lanes = max(128, target // (padded_rows * itemsize))
        tF = max(128, min((max_lanes // 128) * 128, (F // 128) * 128))
        # tF % 128 == 0; if it does not divide F the last block is ragged (legal).
    return tB, tF


def absolute_positional_encoding(x: jax.Array, pos: jax.Array) -> jax.Array:
    """x: (B, T, D), pos: (1, T, D) -> (B, T, D) computing x + pos (broadcast over B)."""
    B, T, D = x.shape
    assert pos.shape == (1, T, D)
    pos = pos.astype(x.dtype)                      # avoid silent dtype promotion in-kernel

    itemsize = jnp.dtype(x.dtype).itemsize
    vmem_cap = _vmem_capacity_bytes()
    sub = _sublane_align(itemsize)

    if D % 128 == 0:
        # ---- lane-dense 3-D path: block (tB, tT, D); pos tile (1, tT, D) ----
        tB, tT = _choose_tiles_3d(B, T, D, itemsize, vmem_cap)
        n_outer, n_b = pl.cdiv(T, tT), pl.cdiv(B, tB)

        x_blk_bytes = tB * _round_up(tT, sub) * D * itemsize       # padded bytes
        pos_blk_bytes = _round_up(tT, sub) * D * itemsize

        in_specs = [
            pl.BlockSpec((tB, tT, D), lambda t, b: (b, t, 0)),     # x tile
            pl.BlockSpec((1, tT, D), lambda t, b: (0, t, 0)),      # pos (constant over b)
        ]
        out_spec = pl.BlockSpec((tB, tT, D), lambda t, b: (b, t, 0))
        out_shape = jax.ShapeDtypeStruct((B, T, D), x.dtype)
        operands = (x, pos)
        reshape_back = None
    else:
        # ---- fallback: flatten (T, D) -> F; tF multiple of 128, ragged last block ----
        F = T * D
        x2, pos2 = x.reshape(B, F), pos.reshape(1, F)
        tB, tF = _choose_tiles_2d(B, F, itemsize, vmem_cap)
        n_outer, n_b = pl.cdiv(F, tF), pl.cdiv(B, tB)

        x_blk_bytes = _round_up(tB, sub) * _round_up(tF, 128) * itemsize   # padded bytes
        pos_blk_bytes = _round_up(1, sub) * _round_up(tF, 128) * itemsize

        in_specs = [
            pl.BlockSpec((tB, tF), lambda f, b: (b, f)),           # x tile
            pl.BlockSpec((1, tF), lambda f, b: (0, f)),            # pos (constant over b)
        ]
        out_spec = pl.BlockSpec((tB, tF), lambda f, b: (b, f))
        out_shape = jax.ShapeDtypeStruct((B, F), x.dtype)
        operands = (x2, pos2)
        reshape_back = (B, T, D)

    # Padded-byte VMEM budget: double-buffered x, out and pos, plus Mosaic headroom.
    need = 2 * x_blk_bytes + 2 * x_blk_bytes + 2 * pos_blk_bytes + (8 << 20)
    vmem_limit = int(min(max(16 << 20, need), (9 * vmem_cap) // 10))

    out = pl.pallas_call(
        _add_pos_kernel,
        out_shape=out_shape,
        grid_spec=pltpu.PrefetchScalarGridSpec(
            num_scalar_prefetch=0,
            # Token/feature tile axis outermost ("parallel" -> both v7x TCs get work
            # even for tiny batch); batch axis innermost so the pos block index is
            # constant across inner steps and its tile stays resident (no re-DMA).
            grid=(n_outer, n_b),
            in_specs=in_specs,
            out_specs=out_spec,
        ),
        compiler_params=pltpu.CompilerParams(
            dimension_semantics=("parallel", "parallel"),
            vmem_limit_bytes=vmem_limit,
        ),
    )(*operands)

    return out if reshape_back is None else out.reshape(reshape_back)


if __name__ == "__main__":
    # Small shapes consistent with the module: batch=2, tokens=8, dim=32.
    B, T, D = 2, 8, 32

    key = jax.random.PRNGKey(0)
    kx, kp = jax.random.split(key)

    x = jax.random.normal(kx, (B, T, D), dtype=jnp.float32)
    # Deterministic "parameter" init (mirrors torch.randn(1, tokens, dim)).
    abs_pos_enc = jax.random.normal(kp, (1, T, D), dtype=jnp.float32)

    out = jax.block_until_ready(absolute_positional_encoding(x, abs_pos_enc))
    ref = x + abs_pos_enc
    assert out.shape == (B, T, D)
    assert jnp.allclose(out, ref, atol=1e-6, rtol=1e-6)

    # Exercise the lane-dense 3-D path (D % 128 == 0) with a split token grid.
    B2, T2, D2 = 2, 16, 128
    x2 = jax.random.normal(kx, (B2, T2, D2), dtype=jnp.float32)
    p2 = jax.random.normal(kp, (1, T2, D2), dtype=jnp.float32)
    out2 = jax.block_until_ready(absolute_positional_encoding(x2, p2))
    assert jnp.allclose(out2, x2 + p2, atol=1e-6, rtol=1e-6)

    # Exercise the flattened fallback where T*D is not a multiple of 128.
    T3, D3 = 8, 24
    x3 = jax.random.normal(kx, (B, T3, D3), dtype=jnp.float32)
    p3 = jax.random.normal(kp, (1, T3, D3), dtype=jnp.float32)
    out3 = jax.block_until_ready(absolute_positional_encoding(x3, p3))
    assert jnp.allclose(out3, x3 + p3, atol=1e-6, rtol=1e-6)

    print("KERNEL_OK")
</pallas_src>

<mosaic_0001>
module attributes {stable_mosaic.version = 11 : i64} {
  func.func @_add_pos_kernel(%arg0: i32, %arg1: i32, %arg2: memref<2x256xf32, #tpu.memory_space<vmem>>, %arg3: memref<1x256xf32, #tpu.memory_space<vmem>>, %arg4: memref<2x256xf32, #tpu.memory_space<vmem>>) attributes {dimension_semantics = [#tpu.dimension_semantics<parallel>, #tpu.dimension_semantics<parallel>], iteration_bounds = array<i64: 1, 1>, scalar_prefetch = 0 : i64, scratch_operands = 0 : i64, tpu.core_type = #tpu.core_type<tc>, window_params = [{transform_indices = @transform_0, window_bounds = array<i64: 2, 256>}, {transform_indices = @transform_1, window_bounds = array<i64: 1, 256>}, {transform_indices = @transform_2, window_bounds = array<i64: 2, 256>}]} {
    %c0 = arith.constant 0 : index
    %c0_0 = arith.constant 0 : index
    %0 = vector.load %arg2[%c0, %c0_0] : memref<2x256xf32, #tpu.memory_space<vmem>>, vector<2x256xf32>
    %c0_1 = arith.constant 0 : index
    %c0_2 = arith.constant 0 : index
    %1 = vector.load %arg3[%c0_1, %c0_2] : memref<1x256xf32, #tpu.memory_space<vmem>>, vector<1x256xf32>
    %2 = vector.broadcast %1 : vector<1x256xf32> to vector<2x256xf32>
    %3 = arith.addf %0, %2 : vector<2x256xf32>
    %c0_3 = arith.constant 0 : index
    %c0_4 = arith.constant 0 : index
    %4 = vector.load %arg4[%c0_3, %c0_4] : memref<2x256xf32, #tpu.memory_space<vmem>>, vector<2x256xf32>
    tpu.vector_store %arg4[%c0_3, %c0_4], %3 {strides = array<i32>} : memref<2x256xf32, #tpu.memory_space<vmem>>, vector<2x256xf32>,
    return
  }
  func.func @transform_0(%arg0: i32, %arg1: i32) -> (i32, i32) {
    %c0_i32 = arith.constant 0 : i32
    return %arg1, %arg0 : i32, i32
  }
  func.func @transform_1(%arg0: i32, %arg1: i32) -> (i32, i32) {
    %c0_i32 = arith.constant 0 : i32
    %c0_i32_0 = arith.constant 0 : i32
    return %c0_i32, %arg0 : i32, i32
  }
  func.func @transform_2(%arg0: i32, %arg1: i32) -> (i32, i32) {
    %c0_i32 = arith.constant 0 : i32
    return %arg1, %arg0 : i32, i32
  }
}

</mosaic_0001>

<bundles_post_ra>
// kernel: tpu_custom_call.1
= control target key start
LH: loop header
LB: loop body
LE: loop exit
PB: predicated region body
PF: predicated region fallthrough
CT: control target
= control target key end

     0   :  { %7 = vsyncpa [#allocation3], 0  ;;  %s172_s0 = inlined_call_operand.hbm [shape: f32[2,256], index: 0, kind: input, shape index: {}]   ;;  %s173_s1 = inlined_call_operand.hbm [shape: f32[1,256], index: 1, kind: input, shape index: {}]   ;;  %s174_s2 = inlined_call_operand.hbm [shape: f32[2,256], index: 2, kind: output, shape index: {}]  }
   0x1   :  { %8 = vsyncpa [#allocation6], 0 }
   0x2   :  { %9 = vsyncpa [#allocation4], 0  ;;  %s144_s9 = smov [#allocation2]   ;;  %s145_s11 = smov [#allocation5]  }
   0x3   :  { %s16_s10 = sshll.u32 %s144_s9, 4  ;;  %s26_s12 = sshll.u32 %s145_s11, 4  ;;  %s17_s10 = int_to_ptr.vmem [resolvable:$true] %s16_s10  ;;  %s27_s12 = int_to_ptr.vmem [resolvable:$true] %s26_s12 }
   0x4   :  { %s86_s13 = scalar_lea.vmem %s17_s10, 64  ;;  %p91_p1 = scmp.lt.s32.totalorder %s17_s10, %s17_s10 }
   0x5   :  { %p87_p0 = scmp.ne.s32.totalorder %s17_s10, %s86_s13  ;;  %p92_p2 = scmp.lt.s32.totalorder %s86_s13, %s86_s13 }
   0x7   :  { %p93_p3 = por %p92_p2, %p91_p1 }
   0x9   :  { %p94_p4 = pnand %p93_p3, %p87_p0 }
   0xb   :  { %97 = shalt.err (!%p94_p4)
}
   0xc   :  { %19 = dma.hbm_to_vmem [thread:$0]  %s172_s0, 64, %s17_s10, [#allocation3]  }
   0xd   :  { %s106_s16 = scalar_lea.vmem %s27_s12, 32  ;;  %p111_p6 = scmp.lt.s32.totalorder %s27_s12, %s27_s12 }
   0xe   :  { %p107_p5 = scmp.ne.s32.totalorder %s27_s12, %s106_s16  ;;  %p112_p7 = scmp.lt.s32.totalorder %s106_s16, %s106_s16 }
  0x10   :  { %p113_p8 = por %p112_p7, %p111_p6 }
  0x12   :  { %p114_p9 = pnand %p113_p8, %p107_p5 }
  0x14   :  { %117 = shalt.err (!%p114_p9)
}
  0x15   :  { %29 = dma.hbm_to_vmem [thread:$0]  %s173_s1, 32, %s27_s12, [#allocation6]  }
  0x16   :  { %138 = dma.done.wait [#allocation3], 64  }
  0x17   :  { %139 = vsyncadd [#allocation3], 4294967232 }
  0x18   :  { %140 = dma.done.wait [#allocation6], 32  }
  0x19   :  { %141 = vsyncadd [#allocation6], 4294967264  ;;  %v39_v0 = vlaneseq  ;;  %v146_v1 = vmov 1983009808   ;;  %v37_v7 = vld [vmem:[#allocation5] sm:$0x3] }
  0x1a   :  { %v49_v2 = vunpack.c.l.s4 %v146_v1  ;;  %v36_v12 = vld [vmem:[#allocation2] sm:$0xf]  ;;  %s147_s0 = smov [#allocation7]  }
  0x1b   :  { %v40_v3 = vshrl.u32 %v39_v0, 7  ;;  %s64_s19 = sshll.u32 %s147_s0, 4  ;;  %s65_s19 = int_to_ptr.vmem [resolvable:$true] %s64_s19 }
  0x1c   :  { %v50_v6 = vunpack.c.0.s8 %v49_v2  ;;  %s118_s1 = scalar_lea.vmem %s65_s19, 64  ;;  %p123_p11 = scmp.lt.s32.totalorder %s65_s19, %s65_s19 }
  0x1d   :  { %v41_v4 = vsub.s32 0, %v40_v3  ;;  %v45_v5 = vsub.s32 1, %v40_v3  ;;  %p119_p10 = scmp.ne.s32.totalorder %s65_s19, %s118_s1  ;;  %p124_p12 = scmp.lt.s32.totalorder %s118_s1, %s118_s1 }
  0x1e   :  { %v53_v10 = vsub.s32 %v50_v6, %v40_v3 }
  0x1f   :  { %v42_v8 = vrot.slane %v37_v7, %v41_v4  ;;  %v46_v9 = vrot.slane %v37_v7, %v45_v5  ;;  %p125_p13 = por %p124_p12, %p123_p11 }
  0x21   :  { %v47_v11 = vcombine.low %v42_v8, %v46_v9  ;;  %p126_p0 = pnand %p125_p13, %p119_p10 }
  0x23   :  { %v54_v13 = vrot.slane %v47_v11, %v53_v10 }
  0x25   :  { %v56_v14 = vadd.f32 %v54_v13, %v36_v12 }
  0x27   :  { %57 = vst [vmem:[#allocation7] sm:$0xf] %v56_v14 }
  0x28   :  { %129 = shalt.err (!%p126_p0)
}
  0x29   :  { %67 = dma.vmem_to_hbm [thread:$0]  %s65_s19, 64, %s174_s2, [#allocation4]  }
  0x2a   :  { %142 = dma.done.wait [#allocation4], 64  }
  0x2b   :  { %143 = vsyncadd [#allocation4], 4294967232 }
  0x2c   :  { %71 = vsyncpa [#allocation3], 1 }
  0x2d   :  { %72 = vsyncpa [#allocation6], 1 }
  0x2e   :  { %73 = vsyncpa [#allocation4], 1 }

</bundles_post_ra>
